<compile_context>
chip_gen: v5e
topology: v5e:2x2
jax: 0.10.0
libtpu: 0.0.40
codegen_flags: <defaults>
</compile_context>

<pallas_src>
import math

import jax
import jax.numpy as jnp
from jax.experimental import pallas as pl
from jax.experimental.pallas import tpu as pltpu

IN_DIM = 448
HID_DIM = 256
OUT_DIM = 3
IN_PAD = 512      # 448 padded up to a 128-lane multiple
OUT_PAD = 128     # 3 padded up to a full lane width -> dense, unmasked stores
NEG_SLOPE = 0.01  # F.leaky_relu default


def _round_up(n, m):
    return ((n + m - 1) // m) * m


def _mlp_kernel(x_ref, w1_ref, b1_ref, w2_ref, b2_ref, o_ref):
    # Layer 1 on the MXU, f32 accumulation.
    h = jnp.dot(x_ref[...], w1_ref[...], preferred_element_type=jnp.float32)
    h = h + b1_ref[...]                      # (TB, 256) + (1, 256) broadcast
    # LeakyReLU on the VPU (f32).
    h = jnp.where(h > 0, h, NEG_SLOPE * h)
    # Layer 2 (output padded to 128 lanes -> lane-dense writeback).
    out = jnp.dot(h.astype(w2_ref.dtype), w2_ref[...],
                  preferred_element_type=jnp.float32)
    out = out + b2_ref[...]                  # (TB, 128) + (1, 128) broadcast
    o_ref[...] = out.astype(o_ref.dtype)


def vgnet_xyz_forward(x, w1, b1, w2, b2, *, block_b=512,
                      compute_dtype=jnp.bfloat16):
    """VGNet_XYZ forward.

    x : [B, 448]   (gf2)
    w1: [448, 256] (mlp31.weight pre-transposed to [in, out])
    b1: [256]
    w2: [256, 3]   (mlp32.weight pre-transposed)
    b2: [3]
    returns [B, 3] in x.dtype.
    """
    B = x.shape[0]
    out_dtype = x.dtype

    # Batch tile: multiple of 8 sublanes, capped by block_b.  The streamed
    # x tile (double-buffered) plus resident weights stay well under the
    # scoped-VMEM default on v5e/v6e/v7x.
    tb = _round_up(min(block_b, _round_up(B, 8)), 8)
    b_pad = _round_up(B, tb)
    grid = (b_pad // tb,)

    # Wrapper-side padding (cheap XLA ops, outside the kernel).
    x_p = jnp.pad(x, ((0, b_pad - B), (0, IN_PAD - IN_DIM))).astype(compute_dtype)
    w1_p = jnp.pad(w1, ((0, IN_PAD - IN_DIM), (0, 0))).astype(compute_dtype)
    w2_p = jnp.pad(w2, ((0, 0), (0, OUT_PAD - OUT_DIM))).astype(compute_dtype)
    b1_p = b1.reshape(1, HID_DIM).astype(jnp.float32)
    b2_p = jnp.pad(b2.reshape(1, OUT_DIM),
                   ((0, 0), (0, OUT_PAD - OUT_DIM))).astype(jnp.float32)

    itemsize = jnp.dtype(compute_dtype).itemsize
    cost = pl.CostEstimate(
        flops=2 * b_pad * IN_PAD * HID_DIM + 2 * b_pad * HID_DIM * OUT_PAD,
        transcendentals=0,
        bytes_accessed=(b_pad * IN_PAD * itemsize              # x
                        + IN_PAD * HID_DIM * itemsize          # w1
                        + HID_DIM * OUT_PAD * itemsize         # w2
                        + (HID_DIM + OUT_PAD) * 4              # biases (f32)
                        + b_pad * OUT_PAD * jnp.dtype(out_dtype).itemsize),
    )

    out = pl.pallas_call(
        _mlp_kernel,
        out_shape=jax.ShapeDtypeStruct((b_pad, OUT_PAD), out_dtype),
        grid=grid,
        in_specs=[
            pl.BlockSpec((tb, IN_PAD), lambda i: (i, 0)),         # x: streamed
            pl.BlockSpec((IN_PAD, HID_DIM), lambda i: (0, 0)),    # w1: resident
            pl.BlockSpec((1, HID_DIM), lambda i: (0, 0)),         # b1: resident
            pl.BlockSpec((HID_DIM, OUT_PAD), lambda i: (0, 0)),   # w2: resident
            pl.BlockSpec((1, OUT_PAD), lambda i: (0, 0)),         # b2: resident
        ],
        out_specs=pl.BlockSpec((tb, OUT_PAD), lambda i: (i, 0)),
        compiler_params=pltpu.CompilerParams(
            dimension_semantics=("parallel",),
        ),
        cost_estimate=cost,
    )(x_p, w1_p, b1_p, w2_p, b2_p)

    # Drop batch padding and the 3 -> 128 output padding.
    return out[:B, :OUT_DIM]


def _init_linear(key, in_features, out_features, dtype=jnp.float32):
    """Deterministic init matching PyTorch nn.Linear default scheme.

    Weight ~ U(-k, k), bias ~ U(-k, k), k = 1/sqrt(in_features).
    Returned weight is already transposed to [in, out].
    """
    k_w, k_b = jax.random.split(key)
    bound = 1.0 / math.sqrt(in_features)
    w = jax.random.uniform(
        k_w, (in_features, out_features), dtype=dtype, minval=-bound, maxval=bound
    )
    b = jax.random.uniform(
        k_b, (out_features,), dtype=dtype, minval=-bound, maxval=bound
    )
    return w, b


def _reference_forward(x, w1, b1, w2, b2):
    h = jnp.dot(x, w1, precision=jax.lax.Precision.HIGHEST) + b1
    h = jnp.where(h > 0, h, NEG_SLOPE * h)
    return jnp.dot(h, w2, precision=jax.lax.Precision.HIGHEST) + b2


if __name__ == "__main__":
    key = jax.random.PRNGKey(0)
    k_x, k_l1, k_l2 = jax.random.split(key, 3)

    B = 8
    x = jax.random.normal(k_x, (B, IN_DIM), dtype=jnp.float32)
    w1, b1 = _init_linear(k_l1, IN_DIM, HID_DIM)
    w2, b2 = _init_linear(k_l2, HID_DIM, OUT_DIM)

    ref = _reference_forward(x, w1, b1, w2, b2)

    # Default bf16 compute path (f32 accumulation).
    out_bf16 = jax.block_until_ready(vgnet_xyz_forward(x, w1, b1, w2, b2))
    assert out_bf16.shape == (B, OUT_DIM)
    assert jnp.allclose(out_bf16, ref, atol=5e-2, rtol=5e-2), \
        "bf16 path mismatch vs reference"

    # Full-precision f32 path (tighter tolerance).
    out_f32 = jax.block_until_ready(
        vgnet_xyz_forward(x, w1, b1, w2, b2, compute_dtype=jnp.float32)
    )
    assert jnp.allclose(out_f32, ref, atol=2e-3, rtol=2e-3), \
        "f32 path mismatch vs reference"

    # Exercise batch padding (B not a multiple of 8).
    out_odd = jax.block_until_ready(
        vgnet_xyz_forward(x[:5], w1, b1, w2, b2)
    )
    assert out_odd.shape == (5, OUT_DIM)
    assert jnp.allclose(out_odd, ref[:5], atol=5e-2, rtol=5e-2), \
        "padded-batch path mismatch vs reference"

    print("KERNEL_OK")
</pallas_src>

<mosaic_0001>
module attributes {stable_mosaic.version = 11 : i64} {
  func.func @_mlp_kernel(%arg0: i32, %arg1: memref<8x512xbf16, #tpu.memory_space<vmem>>, %arg2: memref<512x256xbf16, #tpu.memory_space<vmem>>, %arg3: memref<1x256xf32, #tpu.memory_space<vmem>>, %arg4: memref<256x128xbf16, #tpu.memory_space<vmem>>, %arg5: memref<1x128xf32, #tpu.memory_space<vmem>>, %arg6: memref<8x128xf32, #tpu.memory_space<vmem>>) attributes {dimension_semantics = [#tpu.dimension_semantics<parallel>], iteration_bounds = array<i64: 1>, scalar_prefetch = 0 : i64, scratch_operands = 0 : i64, tpu.core_type = #tpu.core_type<tc>, window_params = [{transform_indices = @transform_0, window_bounds = array<i64: 8, 512>}, {pipeline_mode = #tpu.pipeline_mode<synchronous>, transform_indices = @transform_1, window_bounds = array<i64: 512, 256>}, {pipeline_mode = #tpu.pipeline_mode<synchronous>, transform_indices = @transform_2, window_bounds = array<i64: 1, 256>}, {pipeline_mode = #tpu.pipeline_mode<synchronous>, transform_indices = @transform_3, window_bounds = array<i64: 256, 128>}, {pipeline_mode = #tpu.pipeline_mode<synchronous>, transform_indices = @transform_4, window_bounds = array<i64: 1, 128>}, {transform_indices = @transform_5, window_bounds = array<i64: 8, 128>}]} {
    %c0 = arith.constant 0 : index
    %c0_0 = arith.constant 0 : index
    %0 = vector.load %arg1[%c0, %c0_0] : memref<8x512xbf16, #tpu.memory_space<vmem>>, vector<8x512xbf16>
    %c0_1 = arith.constant 0 : index
    %c0_2 = arith.constant 0 : index
    %1 = vector.load %arg2[%c0_1, %c0_2] : memref<512x256xbf16, #tpu.memory_space<vmem>>, vector<512x256xbf16>
    %cst = arith.constant dense<0.000000e+00> : vector<8x256xf32>
    %2 = tpu.matmul %0, %1, %cst {dimension_numbers = #tpu.dot_dimension_numbers<[1], [0], [0], [1], [0, 0, 1, 1], [], []>} : vector<8x512xbf16>, vector<512x256xbf16>, vector<8x256xf32> -> vector<8x256xf32>
    %c0_3 = arith.constant 0 : index
    %c0_4 = arith.constant 0 : index
    %3 = vector.load %arg3[%c0_3, %c0_4] : memref<1x256xf32, #tpu.memory_space<vmem>>, vector<1x256xf32>
    %4 = vector.broadcast %3 : vector<1x256xf32> to vector<8x256xf32>
    %5 = arith.addf %2, %4 : vector<8x256xf32>
    %cst_5 = arith.constant 0.000000e+00 : f32
    %6 = vector.broadcast %cst_5 : f32 to vector<8x256xf32>
    %7 = arith.cmpf ogt, %5, %6 : vector<8x256xf32>
    %cst_6 = arith.constant 0.00999999977 : f32
    %8 = vector.broadcast %cst_6 : f32 to vector<8x256xf32>
    %9 = arith.mulf %8, %5 : vector<8x256xf32>
    %10 = arith.select %7, %5, %9 : vector<8x256xi1>, vector<8x256xf32>
    %11 = arith.truncf %10 : vector<8x256xf32> to vector<8x256xbf16>
    %c0_7 = arith.constant 0 : index
    %c0_8 = arith.constant 0 : index
    %12 = vector.load %arg4[%c0_7, %c0_8] : memref<256x128xbf16, #tpu.memory_space<vmem>>, vector<256x128xbf16>
    %cst_9 = arith.constant dense<0.000000e+00> : vector<8x128xf32>
    %13 = tpu.matmul %11, %12, %cst_9 {dimension_numbers = #tpu.dot_dimension_numbers<[1], [0], [0], [1], [0, 0, 1, 1], [], []>} : vector<8x256xbf16>, vector<256x128xbf16>, vector<8x128xf32> -> vector<8x128xf32>
    %c0_10 = arith.constant 0 : index
    %c0_11 = arith.constant 0 : index
    %14 = vector.load %arg5[%c0_10, %c0_11] : memref<1x128xf32, #tpu.memory_space<vmem>>, vector<1x128xf32>
    %15 = vector.broadcast %14 : vector<1x128xf32> to vector<8x128xf32>
    %16 = arith.addf %13, %15 : vector<8x128xf32>
    %c0_12 = arith.constant 0 : index
    %c0_13 = arith.constant 0 : index
    %17 = vector.load %arg6[%c0_12, %c0_13] : memref<8x128xf32, #tpu.memory_space<vmem>>, vector<8x128xf32>
    tpu.vector_store %arg6[%c0_12, %c0_13], %16 {strides = array<i32>} : memref<8x128xf32, #tpu.memory_space<vmem>>, vector<8x128xf32>,
    return
  }
  func.func @transform_0(%arg0: i32) -> (i32, i32) {
    %c0_i32 = arith.constant 0 : i32
    %c0_i32_0 = arith.constant 0 : i32
    return %arg0, %c0_i32 : i32, i32
  }
  func.func @transform_1(%arg0: i32) -> (i32, i32) {
    %c0_i32 = arith.constant 0 : i32
    %c0_i32_0 = arith.constant 0 : i32
    %c0_i32_1 = arith.constant 0 : i32
    return %c0_i32, %c0_i32_0 : i32, i32
  }
  func.func @transform_2(%arg0: i32) -> (i32, i32) {
    %c0_i32 = arith.constant 0 : i32
    %c0_i32_0 = arith.constant 0 : i32
    %c0_i32_1 = arith.constant 0 : i32
    return %c0_i32, %c0_i32_0 : i32, i32
  }
  func.func @transform_3(%arg0: i32) -> (i32, i32) {
    %c0_i32 = arith.constant 0 : i32
    %c0_i32_0 = arith.constant 0 : i32
    %c0_i32_1 = arith.constant 0 : i32
    return %c0_i32, %c0_i32_0 : i32, i32
  }
  func.func @transform_4(%arg0: i32) -> (i32, i32) {
    %c0_i32 = arith.constant 0 : i32
    %c0_i32_0 = arith.constant 0 : i32
    %c0_i32_1 = arith.constant 0 : i32
    return %c0_i32, %c0_i32_0 : i32, i32
  }
  func.func @transform_5(%arg0: i32) -> (i32, i32) {
    %c0_i32 = arith.constant 0 : i32
    %c0_i32_0 = arith.constant 0 : i32
    return %arg0, %c0_i32 : i32, i32
  }
}

</mosaic_0001>

<bundles_post_ra>
// kernel: tpu_custom_call.1
= control target key start
LH: loop header
LB: loop body
LE: loop exit
PB: predicated region body
PF: predicated region fallthrough
CT: control target
= control target key end

     0   :  { %10 = vsyncpa [#allocation3], 0  ;;  %s1387_s0 = inlined_call_operand.hbm [shape: bf16[8,512], index: 0, kind: input, shape index: {}]   ;;  %s1388_s1 = inlined_call_operand.hbm [shape: bf16[512,256], index: 1, kind: input, shape index: {}]   ;;  %s1389_s2 = inlined_call_operand.hbm [shape: f32[1,256], index: 2, kind: input, shape index: {}]   ;;  %s1390_s3 = inlined_call_operand.hbm [shape: bf16[256,128], index: 3, kind: input, shape index: {}]   ;;  %s1391_s4 = inlined_call_operand.vmem [shape: f32[1,128], index: 4, kind: input, shape index: {}]   ;;  %s1392_s5 = inlined_call_operand.hbm [shape: f32[8,128], index: 5, kind: output, shape index: {}]  }
   0x1   :  { %11 = vsyncpa [#allocation6], 0 }
   0x2   :  { %12 = vsyncpa [#allocation9], 0  ;;  %s29_s20 = sshll.u32 %s1388_s1, 4  ;;  %s30_s20 = int_to_ptr.hbm [resolvable:$true] %s29_s20 }
   0x3   :  { %13 = vsyncpa [#allocation4], 0  ;;  %s1314_s21 = smov [#allocation5]   ;;  %s19_s25 = sshll.u32 %s1387_s0, 4  ;;  %s20_s25 = int_to_ptr.hbm [resolvable:$true] %s19_s25 }
   0x4   :  { %s31_s22 = sshll.u32 %s1314_s21, 4  ;;  %s1315_s26 = smov 128   ;;  %s32_s22 = int_to_ptr.vmem [resolvable:$true] %s31_s22 }
   0x5   :  { %s1316_s27 = smov 8   ;;  %s1317_s28 = smov [#allocation2]  }
   0x6   :  { %37 = dma.hbm_to_vmem [thread:$0]  %s30_s20, 8192, %s32_s22, [#allocation6], %s1315_s26, %s1315_s26, %s1316_s27  }
   0x7   :  { %s21_s29 = sshll.u32 %s1317_s28, 4  ;;  %s43_s7 = sshll.u32 %s1389_s2, 4  ;;  %s22_s29 = int_to_ptr.vmem [resolvable:$true] %s21_s29  ;;  %s44_s7 = int_to_ptr.hbm [resolvable:$true] %s43_s7 }
   0x8   :  { %24 = dma.hbm_to_vmem [thread:$0]  %s20_s25, 256, %s22_s29, [#allocation3]  }
   0x9   :  { %s53_s9 = sshll.u32 %s1390_s3, 4  ;;  %s1318_s10 = smov [#allocation7]   ;;  %s54_s9 = int_to_ptr.hbm [resolvable:$true] %s53_s9 }
   0xa   :  { %s45_s11 = sshll.u32 %s1318_s10, 4  ;;  %s1319_s0 = smov [#allocation8]   ;;  %s46_s11 = int_to_ptr.vmem [resolvable:$true] %s45_s11 }
   0xb   :  { %48 = dma.hbm_to_vmem [thread:$0]  %s44_s7, 32, %s46_s11, [#allocation6]  }
   0xc   :  { %s55_s12 = sshll.u32 %s1319_s0, 4  ;;  %s1320_s13 = smov 64   ;;  %s56_s12 = int_to_ptr.vmem [resolvable:$true] %s55_s12 }
   0xd   :  { %s1321_s14 = smov 4  }
   0xe   :  { %61 = dma.hbm_to_vmem [thread:$0]  %s54_s9, 2048, %s56_s12, [#allocation9], %s1320_s13, %s1320_s13, %s1321_s14  }
   0xf   :  { %1306 = dma.done.wait [#allocation3], 256  }
  0x10   :  { %1307 = vsyncadd [#allocation3], 4294967040 }
  0x11   :  { %1308 = dma.done.wait [#allocation6], 8224  }
  0x12   :  { %1309 = vsyncadd [#allocation6], 4294959072 }
  0x13   :  { %1310 = dma.done.wait [#allocation9], 2048  }
  0x14   :  { %1311 = vsyncadd [#allocation9], 4294965248  ;;  %v834_v0 = vld [vmem:[#allocation5 + $0x70] sm:$0xf]  ;;  %v1111_v1 = vld [vmem:[#allocation5 + $0x74] sm:$0xf0] }
  0x15   :  { %v898_v2 = vld [vmem:[#allocation5 + $0xf0] sm:$0xf]  ;;  %v835_v3 = vor.u32 %v1111_v1, %v834_v0  ;;  %v1127_v4 = vld [vmem:[#allocation5 + $0xf4] sm:$0xf0]  ;;  %v826_v11 = vld [vmem:[#allocation5 + $0x60] sm:$0xf] }
  0x16   :  { %v962_v5 = vld [vmem:[#allocation5 + $0x170] sm:$0xf]  ;;  %v1143_v6 = vld [vmem:[#allocation5 + $0x174] sm:$0xf0]  ;;  %v899_v7 = vor.u32 %v1127_v4, %v898_v2  ;;  %v1109_v13 = vld [vmem:[#allocation5 + $0x64] sm:$0xf0] }
  0x17   :  { %v963_v8 = vor.u32 %v1143_v6, %v962_v5  ;;  %v1026_v9 = vld [vmem:[#allocation5 + $0x1f0] sm:$0xf]  ;;  %v1159_v10 = vld [vmem:[#allocation5 + $0x1f4] sm:$0xf0]  ;;  %486 = vmatpush.bf16.msra.mxu0 %v835_v3  ;;  %v890_v14 = vld [vmem:[#allocation5 + $0xe0] sm:$0xf]  ;;  %v827_v16 = vor.u32 %v1109_v13, %v826_v11 }
  0x18   :  { %v1027_v12 = vor.u32 %v1159_v10, %v1026_v9  ;;  %v1125_v15 = vld [vmem:[#allocation5 + $0xe4] sm:$0xf0]  ;;  %499 = vmatpush.bf16.msra.mxu1 %v899_v7  ;;  %v954_v18 = vld [vmem:[#allocation5 + $0x160] sm:$0xf]  ;;  %v818_v23 = vld [vmem:[#allocation5 + $0x50] sm:$0xf] }
  0x19   :  { %512 = vmatpush.bf16.msra.mxu2 %v963_v8  ;;  %v891_v17 = vor.u32 %v1125_v15, %v890_v14  ;;  %v1141_v19 = vld [vmem:[#allocation5 + $0x164] sm:$0xf0]  ;;  %v1018_v20 = vld [vmem:[#allocation5 + $0x1e0] sm:$0xf]  ;;  %v1107_v24 = vld [vmem:[#allocation5 + $0x54] sm:$0xf0] }
  0x1a   :  { %525 = vmatpush.bf16.msra.mxu3 %v1027_v12  ;;  %v955_v21 = vor.u32 %v1141_v19, %v954_v18  ;;  %v1157_v22 = vld [vmem:[#allocation5 + $0x1e4] sm:$0xf0]  ;;  %v882_v26 = vld [vmem:[#allocation5 + $0xd0] sm:$0xf]  ;;  %v1123_v27 = vld [vmem:[#allocation5 + $0xd4] sm:$0xf0]  ;;  %v819_v29 = vor.u32 %v1107_v24, %v818_v23 }
  0x1b   :  { %v1019_v25 = vor.u32 %v1157_v22, %v1018_v20  ;;  %v946_v28 = vld [vmem:[#allocation5 + $0x150] sm:$0xf]  ;;  %487 = vmatpush.bf16.msra.mxu0 %v827_v16  ;;  %v1139_v30 = vld [vmem:[#allocation5 + $0x154] sm:$0xf0]  ;;  %v883_v33 = vor.u32 %v1123_v27, %v882_v26  ;;  %v810_v35 = vld [vmem:[#allocation5 + $0x40] sm:$0xf] }
  0x1c   :  { %v1010_v31 = vld [vmem:[#allocation5 + $0x1d0] sm:$0xf]  ;;  %v1155_v32 = vld [vmem:[#allocation5 + $0x1d4] sm:$0xf0]  ;;  %500 = vmatpush.bf16.msra.mxu1 %v891_v17  ;;  %v947_v34 = vor.u32 %v1139_v30, %v946_v28  ;;  %v1105_v36 = vld [vmem:[#allocation5 + $0x44] sm:$0xf0] }
  0x1d   :  { %513 = vmatpush.bf16.msra.mxu2 %v955_v21  ;;  %v874_v37 = vld [vmem:[#allocation5 + $0xc0] sm:$0xf]  ;;  %v1011_v38 = vor.u32 %v1155_v32, %v1010_v31  ;;  %v1121_v39 = vld [vmem:[#allocation5 + $0xc4] sm:$0xf0]  ;;  %v811_v44 = vor.u32 %v1105_v36, %v810_v35  ;;  %v802_v47 = vld [vmem:[#allocation5 + $0x30] sm:$0xf] }
  0x1e   :  { %526 = vmatpush.bf16.msra.mxu3 %v1019_v25  ;;  %v938_v40 = vld [vmem:[#allocation5 + $0x140] sm:$0xf]  ;;  %v1137_v41 = vld [vmem:[#allocation5 + $0x144] sm:$0xf0]  ;;  %v875_v45 = vor.u32 %v1121_v39, %v874_v37  ;;  %v1103_v48 = vld [vmem:[#allocation5 + $0x34] sm:$0xf0] }
  0x1f   :  { %v1002_v42 = vld [vmem:[#allocation5 + $0x1c0] sm:$0xf]  ;;  %v1153_v43 = vld [vmem:[#allocation5 + $0x1c4] sm:$0xf0]  ;;  %488 = vmatpush.bf16.msra.mxu0 %v819_v29  ;;  %v939_v46 = vor.u32 %v1137_v41, %v938_v40  ;;  %v866_v49 = vld [vmem:[#allocation5 + $0xb0] sm:$0xf]  ;;  %v803_v56 = vor.u32 %v1103_v48, %v802_v47 }
  0x20   :  { %501 = vmatpush.bf16.msra.mxu1 %v883_v33  ;;  %v1003_v50 = vor.u32 %v1153_v43, %v1002_v42  ;;  %v1119_v51 = vld [vmem:[#allocation5 + $0xb4] sm:$0xf0]  ;;  %v930_v52 = vld [vmem:[#allocation5 + $0x130] sm:$0xf]  ;;  %v794_v59 = vld [vmem:[#allocation5 + $0x20] sm:$0xf] }
  0x21   :  { %514 = vmatpush.bf16.msra.mxu2 %v947_v34  ;;  %v1135_v53 = vld [vmem:[#allocation5 + $0x134] sm:$0xf0]  ;;  %v994_v54 = vld [vmem:[#allocation5 + $0x1b0] sm:$0xf]  ;;  %v867_v57 = vor.u32 %v1119_v51, %v866_v49  ;;  %v1101_v60 = vld [vmem:[#allocation5 + $0x24] sm:$0xf0] }
  0x22   :  { %527 = vmatpush.bf16.msra.mxu3 %v1011_v38  ;;  %v1151_v55 = vld [vmem:[#allocation5 + $0x1b4] sm:$0xf0]  ;;  %v931_v58 = vor.u32 %v1135_v53, %v930_v52  ;;  %v858_v61 = vld [vmem:[#allocation5 + $0xa0] sm:$0xf]  ;;  %v1117_v63 = vld [vmem:[#allocation5 + $0xa4] sm:$0xf0]  ;;  %v795_v4 = vor.u32 %v1101_v60, %v794_v59 }
  0x23   :  { %489 = vmatpush.bf16.msra.mxu0 %v811_v44  ;;  %v995_v62 = vor.u32 %v1151_v55, %v994_v54  ;;  %v922_v0 = vld [vmem:[#allocation5 + $0x120] sm:$0xf]  ;;  %v1133_v1 = vld [vmem:[#allocation5 + $0x124] sm:$0xf0]  ;;  %v859_v5 = vor.u32 %v1117_v63, %v858_v61  ;;  %v786_v7 = vld [vmem:[#allocation5 + $0x10] sm:$0xf] }
  0x24   :  { %502 = vmatpush.bf16.msra.mxu1 %v875_v45  ;;  %v986_v2 = vld [vmem:[#allocation5 + $0x1a0] sm:$0xf]  ;;  %v1149_v3 = vld [vmem:[#allocation5 + $0x1a4] sm:$0xf0]  ;;  %v923_v6 = vor.u32 %v1133_v1, %v922_v0  ;;  %v1099_v8 = vld [vmem:[#allocation5 + $0x14] sm:$0xf0] }
  0x25   :  { %515 = vmatpush.bf16.msra.mxu2 %v939_v46  ;;  %v850_v9 = vld [vmem:[#allocation5 + $0x90] sm:$0xf]  ;;  %v987_v10 = vor.u32 %v1149_v3, %v986_v2  ;;  %v1115_v11 = vld [vmem:[#allocation5 + $0x94] sm:$0xf0]  ;;  %v778_v16 = vld [vmem:[#allocation5] sm:$0xf]  ;;  %v787_v17 = vor.u32 %v1099_v8, %v786_v7 }
  0x26   :  { %528 = vmatpush.bf16.msra.mxu3 %v1003_v50  ;;  %v914_v12 = vld [vmem:[#allocation5 + $0x110] sm:$0xf]  ;;  %v1131_v13 = vld [vmem:[#allocation5 + $0x114] sm:$0xf0]  ;;  %v1097_v18 = vld [vmem:[#allocation5 + $0x4] sm:$0xf0]  ;;  %v851_v21 = vor.u32 %v1115_v11, %v850_v9 }
  0x27   :  { %490 = vmatpush.bf16.msra.mxu0 %v803_v56  ;;  %v978_v14 = vld [vmem:[#allocation5 + $0x190] sm:$0xf]  ;;  %v1147_v15 = vld [vmem:[#allocation5 + $0x194] sm:$0xf0]  ;;  %v842_v19 = vld [vmem:[#allocation5 + $0x80] sm:$0xf]  ;;  %v915_v22 = vor.u32 %v1131_v13, %v914_v12  ;;  %v779_v33 = vor.u32 %v1097_v18, %v778_v16 }
  0x28   :  { %503 = vmatpush.bf16.msra.mxu1 %v867_v57  ;;  %v1113_v20 = vld [vmem:[#allocation5 + $0x84] sm:$0xf0]  ;;  %v906_v23 = vld [vmem:[#allocation5 + $0x100] sm:$0xf]  ;;  %v979_v26 = vor.u32 %v1147_v15, %v978_v14  ;;  %v1110_v28 = vld [vmem:[#allocation5 + $0x74] sm:$0xf] }
  0x29   :  { %516 = vmatpush.bf16.msra.mxu2 %v931_v58  ;;  %v1129_v24 = vld [vmem:[#allocation5 + $0x104] sm:$0xf0]  ;;  %v970_v25 = vld [vmem:[#allocation5 + $0x180] sm:$0xf]  ;;  %v836_v29 = vld [vmem:[#allocation5 + $0x78] sm:$0xf0]  ;;  %v843_v38 = vor.u32 %v1113_v20, %v842_v19 }
  0x2a   :  { %529 = vmatpush.bf16.msra.mxu3 %v995_v62  ;;  %v1145_v27 = vld [vmem:[#allocation5 + $0x184] sm:$0xf0]  ;;  %v1126_v30 = vld [vmem:[#allocation5 + $0xf4] sm:$0xf]  ;;  %v900_v31 = vld [vmem:[#allocation5 + $0xf8] sm:$0xf0]  ;;  %v907_v39 = vor.u32 %v1129_v24, %v906_v23  ;;  %v839_v45 = vor.u32 %v1110_v28, %v836_v29 }
  0x2b   :  { %491 = vmatpush.bf16.msra.mxu0 %v795_v4  ;;  %v81_v32 = vld [vmem:[#allocation2 + $0x8] sm:$0xff]  ;;  %v1142_v34 = vld [vmem:[#allocation5 + $0x174] sm:$0xf]  ;;  %v971_v44 = vor.u32 %v1145_v27, %v970_v25  ;;  %v903_v47 = vor.u32 %v1126_v30, %v900_v31  ;;  %v1108_v49 = vld [vmem:[#allocation5 + $0x64] sm:$0xf]  ;;  %s1322_s15 = smov [#allocation10]  }
  0x2c   :  { %504 = vmatpush.bf16.msra.mxu1 %v859_v5  ;;  %v964_v35 = vld [vmem:[#allocation5 + $0x178] sm:$0xf0]  ;;  %v156_v36 = vunpack.c.l.b16 %v81_v32  ;;  %v80_v37 = vld [vmem:[#allocation2] sm:$0xff]  ;;  %v157_v43 = vunpack.c.h.b16 %v81_v32  ;;  %v828_v50 = vld [vmem:[#allocation5 + $0x68] sm:$0xf0]  ;;  %s762_s16 = sshll.u32 %s1322_s15, 4  ;;  %s763_s16 = int_to_ptr.vmem [resolvable:$true] %s762_s16 }
  0x2d   :  { %517 = vmatpush.bf16.msra.mxu2 %v923_v6  ;;  %v1158_v40 = vld [vmem:[#allocation5 + $0x1f4] sm:$0xf]  ;;  %v1028_v41 = vld [vmem:[#allocation5 + $0x1f8] sm:$0xf0]  ;;  %v154_v42 = vunpack.c.l.b16 %v80_v37  ;;  %v155_v46 = vunpack.c.h.b16 %v80_v37  ;;  %v967_v48 = vor.u32 %v1142_v34, %v964_v35  ;;  %v1124_v51 = vld [vmem:[#allocation5 + $0xe4] sm:$0xf]  ;;  %v831_v61 = vor.u32 %v1108_v49, %v828_v50 }
  0x2e   :  { %530 = vmatpush.bf16.msra.mxu3 %v987_v10  ;;  %v1031_v52 = vor.u32 %v1158_v40, %v1028_v41  ;;  %v892_v53 = vld [vmem:[#allocation5 + $0xe8] sm:$0xf0]  ;;  %v1140_v54 = vld [vmem:[#allocation5 + $0x164] sm:$0xf]  ;;  %v1365_v56 = vpack.c.b16 %v156_v36, %v156_v36  ;;  %v1369_v60 = vpack.c.b16 %v157_v43, %v157_v43  ;;  %v1106_v1 = vld [vmem:[#allocation5 + $0x54] sm:$0xf] }
  0x2f   :  { %492 = vmatpush.bf16.msra.mxu0 %v787_v17  ;;  %v956_v55 = vld [vmem:[#allocation5 + $0x168] sm:$0xf0]  ;;  %v1156_v57 = vld [vmem:[#allocation5 + $0x1e4] sm:$0xf]  ;;  %v1367_v59 = vpack.c.b16 %v154_v42, %v154_v42  ;;  %v1371_v62 = vpack.c.b16 %v155_v46, %v155_v46  ;;  %v895_v63 = vor.u32 %v1124_v51, %v892_v53  ;;  %v820_v2 = vld [vmem:[#allocation5 + $0x58] sm:$0xf0] }
  0x30   :  { %505 = vmatpush.bf16.msra.mxu1 %v851_v21  ;;  %v1020_v58 = vld [vmem:[#allocation5 + $0x1e8] sm:$0xf0]  ;;  %v959_v0 = vor.u32 %v1140_v54, %v956_v55  ;;  %v1122_v3 = vld [vmem:[#allocation5 + $0xd4] sm:$0xf]  ;;  %v884_v5 = vld [vmem:[#allocation5 + $0xd8] sm:$0xf0]  ;;  %v823_v10 = vor.u32 %v1106_v1, %v820_v2 }
  0x31   :  { %518 = vmatpush.bf16.msra.mxu2 %v915_v22  ;;  %v1023_v4 = vor.u32 %v1156_v57, %v1020_v58  ;;  %v1138_v6 = vld [vmem:[#allocation5 + $0x154] sm:$0xf]  ;;  %v948_v7 = vld [vmem:[#allocation5 + $0x158] sm:$0xf0]  ;;  %v887_v11 = vor.u32 %v1122_v3, %v884_v5  ;;  %v1104_v13 = vld [vmem:[#allocation5 + $0x44] sm:$0xf] }
  0x32   :  { %531 = vmatpush.bf16.msra.mxu3 %v979_v26  ;;  %v1154_v8 = vld [vmem:[#allocation5 + $0x1d4] sm:$0xf]  ;;  %v1012_v9 = vld [vmem:[#allocation5 + $0x1d8] sm:$0xf0]  ;;  %v951_v12 = vor.u32 %v1138_v6, %v948_v7  ;;  %v812_v14 = vld [vmem:[#allocation5 + $0x48] sm:$0xf0] }
  0x33   :  { %493 = vmatpush.bf16.msra.mxu0 %v779_v33  ;;  %v1120_v15 = vld [vmem:[#allocation5 + $0xc4] sm:$0xf]  ;;  %v1015_v16 = vor.u32 %v1154_v8, %v1012_v9  ;;  %v876_v17 = vld [vmem:[#allocation5 + $0xc8] sm:$0xf0]  ;;  %v815_v22 = vor.u32 %v1104_v13, %v812_v14  ;;  %v1102_v25 = vld [vmem:[#allocation5 + $0x34] sm:$0xf] }
  0x34   :  { %506 = vmatpush.bf16.msra.mxu1 %v843_v38  ;;  %v1136_v18 = vld [vmem:[#allocation5 + $0x144] sm:$0xf]  ;;  %v940_v19 = vld [vmem:[#allocation5 + $0x148] sm:$0xf0]  ;;  %v879_v23 = vor.u32 %v1120_v15, %v876_v17  ;;  %v804_v26 = vld [vmem:[#allocation5 + $0x38] sm:$0xf0] }
  0x35   :  { %519 = vmatpush.bf16.msra.mxu2 %v907_v39  ;;  %v1152_v20 = vld [vmem:[#allocation5 + $0x1c4] sm:$0xf]  ;;  %v1004_v21 = vld [vmem:[#allocation5 + $0x1c8] sm:$0xf0]  ;;  %v943_v24 = vor.u32 %v1136_v18, %v940_v19  ;;  %v1118_v27 = vld [vmem:[#allocation5 + $0xb4] sm:$0xf]  ;;  %v807_v34 = vor.u32 %v1102_v25, %v804_v26 }
  0x36   :  { %532 = vmatpush.bf16.msra.mxu3 %v971_v44  ;;  %494 = vmatmul.bf16.vlgmr.msra.gmra.mxu0 %v1367_v59  ;;  %v1007_v28 = vor.u32 %v1152_v20, %v1004_v21  ;;  %v868_v29 = vld [vmem:[#allocation5 + $0xb8] sm:$0xf0]  ;;  %v1134_v30 = vld [vmem:[#allocation5 + $0x134] sm:$0xf]  ;;  %v1100_v37 = vld [vmem:[#allocation5 + $0x24] sm:$0xf] }
  0x37   :  { %538 = vmatpush.bf16.msrb.mxu0 %v839_v45  ;;  %507 = vmatmul.bf16.vlgmr.msra.gmra.mxu1 %v1371_v62  ;;  %v932_v31 = vld [vmem:[#allocation5 + $0x138] sm:$0xf0]  ;;  %v1150_v32 = vld [vmem:[#allocation5 + $0x1b4] sm:$0xf]  ;;  %v871_v35 = vor.u32 %v1118_v27, %v868_v29  ;;  %v796_v38 = vld [vmem:[#allocation5 + $0x28] sm:$0xf0] }
  0x38   :  { %551 = vmatpush.bf16.msrb.mxu1 %v903_v47  ;;  %520 = vmatmul.bf16.vlgmr.msra.gmra.mxu2 %v1365_v56  ;;  %v996_v33 = vld [vmem:[#allocation5 + $0x1b8] sm:$0xf0]  ;;  %v935_v36 = vor.u32 %v1134_v30, %v932_v31  ;;  %v1116_v39 = vld [vmem:[#allocation5 + $0xa4] sm:$0xf]  ;;  %v860_v41 = vld [vmem:[#allocation5 + $0xa8] sm:$0xf0]  ;;  %v799_v46 = vor.u32 %v1100_v37, %v796_v38 }
  0x39   :  { %564 = vmatpush.bf16.msrb.mxu2 %v967_v48  ;;  %533 = vmatmul.bf16.vlgmr.msra.gmra.mxu3 %v1369_v60  ;;  %v999_v40 = vor.u32 %v1150_v32, %v996_v33  ;;  %v1132_v42 = vld [vmem:[#allocation5 + $0x124] sm:$0xf]  ;;  %v924_v43 = vld [vmem:[#allocation5 + $0x128] sm:$0xf0]  ;;  %v863_v47 = vor.u32 %v1116_v39, %v860_v41  ;;  %v1098_v49 = vld [vmem:[#allocation5 + $0x14] sm:$0xf] }
  0x3a   :  { %577 = vmatpush.bf16.msrb.mxu3 %v1031_v52  ;;  %v1148_v44 = vld [vmem:[#allocation5 + $0x1a4] sm:$0xf]  ;;  %v988_v45 = vld [vmem:[#allocation5 + $0x1a8] sm:$0xf0]  ;;  %v927_v48 = vor.u32 %v1132_v42, %v924_v43  ;;  %v788_v50 = vld [vmem:[#allocation5 + $0x18] sm:$0xf0] }
  0x3b   :  { %539 = vmatpush.bf16.msrb.mxu0 %v831_v61  ;;  %v1114_v51 = vld [vmem:[#allocation5 + $0x94] sm:$0xf]  ;;  %v991_v52 = vor.u32 %v1148_v44, %v988_v45  ;;  %v852_v53 = vld [vmem:[#allocation5 + $0x98] sm:$0xf0]  ;;  %v791_v61 = vor.u32 %v1098_v49, %v788_v50  ;;  %v1096_v1 = vld [vmem:[#allocation5 + $0x4] sm:$0xf] }
  0x3c   :  { %552 = vmatpush.bf16.msrb.mxu1 %v895_v63  ;;  %v1130_v54 = vld [vmem:[#allocation5 + $0x114] sm:$0xf]  ;;  %v916_v55 = vld [vmem:[#allocation5 + $0x118] sm:$0xf0]  ;;  %v855_v63 = vor.u32 %v1114_v51, %v852_v53  ;;  %v780_v2 = vld [vmem:[#allocation5 + $0x8] sm:$0xf0] }
  0x3d   :  { %565 = vmatpush.bf16.msrb.mxu2 %v959_v0  ;;  %v1146_v57 = vld [vmem:[#allocation5 + $0x194] sm:$0xf]  ;;  %v980_v58 = vld [vmem:[#allocation5 + $0x198] sm:$0xf0]  ;;  %v919_v0 = vor.u32 %v1130_v54, %v916_v55  ;;  %v1112_v3 = vld [vmem:[#allocation5 + $0x84] sm:$0xf] }
  0x3e   :  { %578 = vmatpush.bf16.msrb.mxu3 %v1023_v4  ;;  %v983_v4 = vor.u32 %v1146_v57, %v980_v58  ;;  %v844_v5 = vld [vmem:[#allocation5 + $0x88] sm:$0xf0]  ;;  %v1128_v6 = vld [vmem:[#allocation5 + $0x104] sm:$0xf]  ;;  %v1167_v14 = vld [vmem:[#allocation8 + $0x38] sm:$0xff]  ;;  %s764_s19 = sshll.u32 %s1392_s5, 4  ;;  %s765_s19 = int_to_ptr.hbm [resolvable:$true] %s764_s19 }
  0x3f   :  { %540 = vmatpush.bf16.msrb.mxu0 %v823_v10  ;;  %v908_v7 = vld [vmem:[#allocation5 + $0x108] sm:$0xf0]  ;;  %v1144_v8 = vld [vmem:[#allocation5 + $0x184] sm:$0xf]  ;;  %v783_v10 = vor.u32 %v1096_v1, %v780_v2  ;;  %v1166_v15 = vld [vmem:[#allocation8 + $0x30] sm:$0xff] }
  0x40   :  { %553 = vmatpush.bf16.msrb.mxu1 %v887_v11  ;;  %v972_v9 = vld [vmem:[#allocation5 + $0x188] sm:$0xf0]  ;;  %v847_v11 = vor.u32 %v1112_v3, %v844_v5  ;;  %v1164_v17 = vld [vmem:[#allocation8 + $0x20] sm:$0xff]  ;;  %v1163_v18 = vld [vmem:[#allocation8 + $0x18] sm:$0xff] }
  0x41   :  { %566 = vmatpush.bf16.msrb.mxu2 %v951_v12  ;;  %v911_v12 = vor.u32 %v1128_v6, %v908_v7  ;;  %v975_v13 = vor.u32 %v1144_v8, %v972_v9  ;;  %v1162_v19 = vld [vmem:[#allocation8 + $0x10] sm:$0xff]  ;;  %v1161_v20 = vld [vmem:[#allocation8 + $0x8] sm:$0xff]  ;;  %v1175_v21 = vld [vmem:[#allocation8 + $0x78] sm:$0xff] }
  0x42   :  { %579 = vmatpush.bf16.msrb.mxu3 %v1015_v16  ;;  %v1165_v16 = vld [vmem:[#allocation8 + $0x28] sm:$0xff]  ;;  %v1170_v25 = vld [vmem:[#allocation8 + $0x50] sm:$0xff]  ;;  %v1168_v37 = vld [vmem:[#allocation8 + $0x40] sm:$0xff] }
  0x43   :  { %541 = vmatpush.bf16.msrb.mxu0 %v815_v22  ;;  %v1160_v22 = vld [vmem:[#allocation8] sm:$0xff]  ;;  %v1169_v31 = vld [vmem:[#allocation8 + $0x48] sm:$0xff] }
  0x44   :  { %554 = vmatpush.bf16.msrb.mxu1 %v879_v23  ;;  %v1185_v1 = vld [vmem:[%s1391_s4] ss:$0 sm:$0xff] }
  0x45   :  { %567 = vmatpush.bf16.msrb.mxu2 %v943_v24  ;;  %v1171_v24 = vld [vmem:[#allocation8 + $0x58] sm:$0xff] }
  0x46   :  { %580 = vmatpush.bf16.msrb.mxu3 %v1007_v28 }
  0x47   :  { %542 = vmatpush.bf16.msrb.mxu0 %v807_v34 }
  0x48   :  { %555 = vmatpush.bf16.msrb.mxu1 %v871_v35 }
  0x49   :  { %568 = vmatpush.bf16.msrb.mxu2 %v935_v36 }
  0x4a   :  { %581 = vmatpush.bf16.msrb.mxu3 %v999_v40 }
  0x4b   :  { %543 = vmatpush.bf16.msrb.mxu0 %v799_v46 }
  0x4c   :  { %556 = vmatpush.bf16.msrb.mxu1 %v863_v47 }
  0x4d   :  { %569 = vmatpush.bf16.msrb.mxu2 %v927_v48 }
  0x4e   :  { %582 = vmatpush.bf16.msrb.mxu3 %v991_v52 }
  0x4f   :  { %544 = vmatpush.bf16.msrb.mxu0 %v791_v61 }
  0x50   :  { %557 = vmatpush.bf16.msrb.mxu1 %v855_v63 }
  0x51   :  { %570 = vmatpush.bf16.msrb.mxu2 %v919_v0 }
  0x52   :  { %583 = vmatpush.bf16.msrb.mxu3 %v983_v4 }
  0x53   :  { %545 = vmatpush.bf16.msrb.mxu0 %v783_v10 }
  0x54   :  { %558 = vmatpush.bf16.msrb.mxu1 %v847_v11 }
  0x55   :  { %571 = vmatpush.bf16.msrb.mxu2 %v911_v12 }
  0x56   :  { %584 = vmatpush.bf16.msrb.mxu3 %v975_v13  ;;  %546 = vmatmul.bf16.vlgmr.msrb.gmra.mxu0 %v1367_v59  ;;  %v1174_v59 = vld [vmem:[#allocation8 + $0x70] sm:$0xff] }
  0x57   :  { %730 = vmatpush.bf16.msra.mxu0 %v1167_v14  ;;  %559 = vmatmul.bf16.vlgmr.msrb.gmra.mxu1 %v1371_v62  ;;  %v146_v62 = vld [vmem:[#allocation7] sm:$0x3] }
  0x58   :  { %572 = vmatmul.bf16.vlgmr.msrb.gmra.mxu2 %v1365_v56  ;;  %743 = vmatpush.bf16.msra.mxu1 %v1175_v21  ;;  %v1173_v56 = vld [vmem:[#allocation8 + $0x68] sm:$0xff]  ;;  %v148_v23 = vperm.slane %v146_v62, 0  ;;  %v149_v43 = vperm.slane %v146_v62, 1 }
  0x59   :  { %585 = vmatmul.bf16.vlgmr.msrb.gmra.mxu3 %v1369_v60  ;;  %v1172_v60 = vld [vmem:[#allocation8 + $0x60] sm:$0xff] }
  0x5b   :  { %731 = vmatpush.bf16.msra.mxu0 %v1166_v15 }
  0x5c   :  { %744 = vmatpush.bf16.msra.mxu1 %v1174_v59 }
  0x5f   :  { %732 = vmatpush.bf16.msra.mxu0 %v1165_v16 }
  0x60   :  { %745 = vmatpush.bf16.msra.mxu1 %v1173_v56 }
  0x63   :  { %733 = vmatpush.bf16.msra.mxu0 %v1164_v17 }
  0x64   :  { %746 = vmatpush.bf16.msra.mxu1 %v1172_v60 }
  0x67   :  { %734 = vmatpush.bf16.msra.mxu0 %v1163_v18 }
  0x68   :  { %747 = vmatpush.bf16.msra.mxu1 %v1171_v24 }
  0x6b   :  { %735 = vmatpush.bf16.msra.mxu0 %v1162_v19 }
  0x6c   :  { %748 = vmatpush.bf16.msra.mxu1 %v1170_v25 }
  0x6f   :  { %736 = vmatpush.bf16.msra.mxu0 %v1161_v20 }
  0x70   :  { %749 = vmatpush.bf16.msra.mxu1 %v1169_v31 }
  0x73   :  { %737 = vmatpush.bf16.msra.mxu0 %v1160_v22 }
  0x74   :  { %750 = vmatpush.bf16.msra.mxu1 %v1168_v37 }
  0xb3   :  { %v495_v26 = vpop.f32.mrf.mxu0 }
  0xb4   :  { %v496_v27 = vadd.f32 %v495_v26, %v148_v23  ;;  %v508_v28 = vpop.f32.mrf.mxu1 }
  0xb6   :  { %v509_v29 = vadd.f32 %v508_v28, %v496_v27 }
  0xbb   :  { %v521_v30 = vpop.f32.mrf.mxu2  ;;  %v497_v35 = vpop.f32.mrf.mxu0 }
  0xbc   :  { %v522_v32 = vadd.f32 %v521_v30, %v509_v29  ;;  %v534_v33 = vpop.f32.mrf.mxu3  ;;  %v510_v36 = vpop.f32.mrf.mxu1 }
  0xbe   :  { %v535_v34 = vadd.f32 %v534_v33, %v522_v32 }
  0xc0   :  { %vm590_vm0 = vcmp.gt.f32.partialorder %v535_v34, 0.0  ;;  %v592_v38 = vmul.f32 0.01, %v535_v34 }
  0xc2   :  { %v594_v39 = vsel %vm590_vm0, %v535_v34, %v592_v38 }
  0xc3   :  { %v596_v40 = vpack.c.bf16 %v594_v39, %v594_v39  ;;  %v523_v41 = vpop.f32.mrf.mxu2 }
  0xc4   :  { %v536_v42 = vpop.f32.mrf.mxu3 }
  0xc5   :  { %738 = vmatmul.bf16.vlgmr.msra.gmra.mxu0 %v596_v40 }
  0xd3   :  { %v547_v44 = vpop.f32.mrf.mxu0 }
  0xd4   :  { %v548_v45 = vadd.f32 %v547_v44, %v149_v43  ;;  %v560_v46 = vpop.f32.mrf.mxu1 }
  0xd6   :  { %v561_v47 = vadd.f32 %v560_v46, %v548_v45 }
  0xdb   :  { %v573_v48 = vpop.f32.mrf.mxu2  ;;  %v549_v51 = vpop.f32.mrf.mxu0 }
  0xdc   :  { %v574_v49 = vadd.f32 %v573_v48, %v561_v47  ;;  %v586_v50 = vpop.f32.mrf.mxu3  ;;  %v562_v52 = vpop.f32.mrf.mxu1 }
  0xde   :  { %v587_v53 = vadd.f32 %v586_v50, %v574_v49 }
  0xe0   :  { %vm591_vm1 = vcmp.gt.f32.partialorder %v587_v53, 0.0  ;;  %v593_v54 = vmul.f32 0.01, %v587_v53 }
  0xe2   :  { %v595_v55 = vsel %vm591_vm1, %v587_v53, %v593_v54 }
  0xe3   :  { %v597_v57 = vpack.c.bf16 %v595_v55, %v595_v55  ;;  %v575_v58 = vpop.f32.mrf.mxu2 }
  0xe4   :  { %v588_v61 = vpop.f32.mrf.mxu3 }
  0xe5   :  { %751 = vmatmul.bf16.vlgmr.msra.gmra.mxu1 %v597_v57 }
 0x142   :  { %v739_v63 = vpop.f32.mrf.mxu0 }
 0x143   :  { %v740_v2 = vadd.f32 %v1185_v1, %v739_v63 }
 0x14a   :  { %v741_v0 = vpop.f32.mrf.mxu0 }
 0x162   :  { %v752_v3 = vpop.f32.mrf.mxu1 }
 0x163   :  { %v753_v4 = vadd.f32 %v752_v3, %v740_v2 }
 0x165   :  { %756 = vst [vmem:[#allocation10] sm:$0xff] %v753_v4 }
 0x166   :  { %767 = dma.vmem_to_hbm [thread:$0]  %s763_s16, 128, %s765_s19, [#allocation4]  }
 0x16a   :  { %v754_v5 = vpop.f32.mrf.mxu1 }
 0x16b   :  { %1312 = dma.done.wait [#allocation4], 128  }
 0x16c   :  { %1313 = vsyncadd [#allocation4], 4294967168 }
 0x16d   :  { %772 = vsyncpa [#allocation3], 1 }
 0x16e   :  { %773 = vsyncpa [#allocation6], 1 }
 0x16f   :  { %774 = vsyncpa [#allocation9], 1 }
 0x170   :  { %775 = vsyncpa [#allocation4], 1 }

</bundles_post_ra>
